<compile_context>
chip_gen: v5e
topology: v5e:2x2
jax: 0.10.0
libtpu: 0.0.40
codegen_flags: <defaults>
</compile_context>

<pallas_src>
import functools

import jax
import jax.numpy as jnp
from jax.experimental import pallas as pl
from jax.experimental.pallas import tpu as pltpu


def _attention_kernel(x_ref, wq_ref, wk_ref, wv_ref, wout_ref, bout_ref, o_ref,
                      *, block_b, heads, dim_head, scale):
    # x_ref:    (Bb, N, D)   block of batch elements
    # wq/wk/wv: (H, D, dh)   per-head projection weights (wrapper-side split)
    # wout_ref: (H, dh, D)   per-head row-blocks of the output projection
    # bout_ref: (1, D)       output projection bias
    # o_ref:    (Bb, N, D)
    n = x_ref.shape[1]
    d_model = x_ref.shape[2]
    rows = block_b * n                 # MXU M dimension for the projections
    groups = heads * block_b           # one attention problem per (head, batch)

    # ---- QKV projections: batched over heads, M = Bb*N rows ----------------
    x2 = x_ref[...].reshape(rows, d_model)                    # (Bb*N, D)
    # Hoisted once, reused for all three projections.
    xh = jnp.broadcast_to(x2, (heads, rows, d_model))         # (H, Bb*N, D)

    q = jnp.einsum('hrd,hdk->hrk', xh, wq_ref[...],
                   preferred_element_type=jnp.float32)        # (H, Bb*N, dh)
    k = jnp.einsum('hrd,hdk->hrk', xh, wk_ref[...],
                   preferred_element_type=jnp.float32)
    v = jnp.einsum('hrd,hdk->hrk', xh, wv_ref[...],
                   preferred_element_type=jnp.float32)

    # Regroup (H, Bb*N, dh) -> (H*Bb, N, dh): minor dim unchanged, layout-free.
    q = q.reshape(groups, n, dim_head) * scale
    k = k.reshape(groups, n, dim_head)
    v = v.reshape(groups, n, dim_head)

    # ---- attention, batched over all (head, batch) pairs --------------------
    # Contraction on the last dim of both operands -- no explicit k.T.
    sim = jnp.einsum('bqd,bkd->bqk', q, k,
                     preferred_element_type=jnp.float32)      # (G, N, N)
    sim = sim - jnp.max(sim, axis=-1, keepdims=True)
    p = jnp.exp(sim)
    attn = p * pl.reciprocal(jnp.sum(p, axis=-1, keepdims=True), approx=True)
    out = jnp.einsum('bqk,bkd->bqd', attn, v,
                     preferred_element_type=jnp.float32)      # (G, N, dh)

    # ---- output projection: sum_h out_h @ Wout_h == concat-then-project -----
    out = out.reshape(heads, rows, dim_head)                  # (H, Bb*N, dh)
    z = jnp.einsum('hrd,hde->hre', out, wout_ref[...],
                   preferred_element_type=jnp.float32)        # (H, Bb*N, D)
    y = jnp.sum(z, axis=0) + bout_ref[...]                    # (Bb*N, D)

    o_ref[...] = y.reshape(block_b, n, d_model).astype(o_ref.dtype)


def _pick_block_b(batch, seq, target_rows=256):
    """Largest divisor of `batch` whose row block (Bb*N) stays <= target_rows.

    Folding batch into the MXU M dimension amortises the per-grid-step pipeline
    overhead.  (On v7x one may prefer to keep the resulting grid a multiple of 2
    so work shards across both TensorCores.)"""
    bb = 1
    for cand in range(1, batch + 1):
        if batch % cand == 0 and cand * seq <= max(target_rows, seq):
            bb = cand
    return bb


def attention_pallas(x, w_qkv, w_out, b_out, *, heads, dim_head, block_b=None):
    """x: (B, N, D); w_qkv: (D, 3*heads*dim_head); w_out: (heads*dim_head, D);
    b_out: (D,). Returns (B, N, D)."""
    B, N, D = x.shape
    scale = dim_head ** (-0.5)
    if block_b is None:
        block_b = _pick_block_b(B, N)
    assert B % block_b == 0

    # One-time wrapper-side weight re-layout so the kernel never slices
    # lane-misaligned dh-wide columns.  w_qkv columns are ordered
    # [q(h,d) | k(h,d) | v(h,d)] (PyTorch chunk(3) convention).
    w3 = w_qkv.reshape(D, 3, heads, dim_head)
    wq = jnp.transpose(w3[:, 0], (1, 0, 2))            # (H, D, dh)
    wk = jnp.transpose(w3[:, 1], (1, 0, 2))            # (H, D, dh)
    wv = jnp.transpose(w3[:, 2], (1, 0, 2))            # (H, D, dh)
    wout_h = w_out.reshape(heads, dim_head, D)         # (H, dh, D)
    b_out2 = b_out.reshape(1, D)

    kernel = functools.partial(_attention_kernel, block_b=block_b,
                               heads=heads, dim_head=dim_head, scale=scale)

    return pl.pallas_call(
        kernel,
        out_shape=jax.ShapeDtypeStruct((B, N, D), x.dtype),
        grid_spec=pltpu.PrefetchScalarGridSpec(
            num_scalar_prefetch=0,
            grid=(B // block_b,),
            in_specs=[
                pl.BlockSpec((block_b, N, D), lambda b: (b, 0, 0)),
                pl.BlockSpec((heads, D, dim_head), lambda b: (0, 0, 0)),
                pl.BlockSpec((heads, D, dim_head), lambda b: (0, 0, 0)),
                pl.BlockSpec((heads, D, dim_head), lambda b: (0, 0, 0)),
                pl.BlockSpec((heads, dim_head, D), lambda b: (0, 0, 0)),
                pl.BlockSpec((1, D), lambda b: (0, 0)),
            ],
            out_specs=pl.BlockSpec((block_b, N, D), lambda b: (b, 0, 0)),
        ),
        compiler_params=pltpu.CompilerParams(
            dimension_semantics=("parallel",)),
    )(x, wq, wk, wv, wout_h, b_out2)


def attention_ref(x, w_qkv, w_out, b_out, *, heads, dim_head):
    """Pure-JAX reference mirroring the PyTorch forward."""
    B, N, D = x.shape
    inner = heads * dim_head
    scale = dim_head ** (-0.5)
    qkv = jnp.einsum('bnd,de->bne', x, w_qkv)
    q, k, v = jnp.split(qkv, 3, axis=-1)

    def split_heads(t):  # b n (h d) -> (b h) n d
        return t.reshape(B, N, heads, dim_head).transpose(0, 2, 1, 3).reshape(
            B * heads, N, dim_head)

    q, k, v = map(split_heads, (q, k, v))
    sim = jnp.einsum('bid,bjd->bij', q, k) * scale
    attn = jax.nn.softmax(sim, axis=-1)
    out = jnp.einsum('bij,bjd->bid', attn, v)
    out = out.reshape(B, heads, N, dim_head).transpose(0, 2, 1, 3).reshape(
        B, N, inner)
    return jnp.einsum('bni,id->bnd', out, w_out) + b_out


if __name__ == "__main__":
    # Small shapes consistent with the module's forward: x is (b, n, dim).
    B, N, DIM = 2, 8, 32
    HEADS, DIM_HEAD = 4, 16
    INNER = HEADS * DIM_HEAD

    key = jax.random.PRNGKey(0)
    kx, kqkv, kout, kb = jax.random.split(key, 4)

    x = jax.random.normal(kx, (B, N, DIM), dtype=jnp.float32)
    # nn.Linear(dim, inner*3, bias=False).weight has shape (3*inner, dim);
    # stored transposed as (dim, 3*inner) for right-multiplication.
    w_qkv = jax.random.normal(kqkv, (DIM, 3 * INNER), dtype=jnp.float32) * 0.05
    # nn.Linear(inner, dim).weight has shape (dim, inner); stored transposed.
    w_out = jax.random.normal(kout, (INNER, DIM), dtype=jnp.float32) * 0.05
    b_out = jax.random.normal(kb, (DIM,), dtype=jnp.float32) * 0.05

    out = attention_pallas(x, w_qkv, w_out, b_out, heads=HEADS, dim_head=DIM_HEAD)
    out = jax.block_until_ready(out)

    ref = attention_ref(x, w_qkv, w_out, b_out, heads=HEADS, dim_head=DIM_HEAD)
    assert out.shape == (B, N, DIM)
    # Tolerance loosened slightly vs. the exact-divide version because the
    # softmax denominator now uses the approximate (EUP) reciprocal.
    assert jnp.allclose(out, ref, atol=2e-3, rtol=2e-3), "mismatch vs reference"

    print("KERNEL_OK")
</pallas_src>

<mosaic_0001>
module attributes {stable_mosaic.version = 11 : i64} {
  func.func @_attention_kernel(%arg0: i32, %arg1: memref<2x8x32xf32, #tpu.memory_space<vmem>>, %arg2: memref<4x32x16xf32, #tpu.memory_space<vmem>>, %arg3: memref<4x32x16xf32, #tpu.memory_space<vmem>>, %arg4: memref<4x32x16xf32, #tpu.memory_space<vmem>>, %arg5: memref<4x16x32xf32, #tpu.memory_space<vmem>>, %arg6: memref<1x32xf32, #tpu.memory_space<vmem>>, %arg7: memref<2x8x32xf32, #tpu.memory_space<vmem>>) attributes {dimension_semantics = [#tpu.dimension_semantics<parallel>], iteration_bounds = array<i64: 1>, scalar_prefetch = 0 : i64, scratch_operands = 0 : i64, tpu.core_type = #tpu.core_type<tc>, window_params = [{transform_indices = @transform_0, window_bounds = array<i64: 2, 8, 32>}, {pipeline_mode = #tpu.pipeline_mode<synchronous>, transform_indices = @transform_1, window_bounds = array<i64: 4, 32, 16>}, {pipeline_mode = #tpu.pipeline_mode<synchronous>, transform_indices = @transform_2, window_bounds = array<i64: 4, 32, 16>}, {pipeline_mode = #tpu.pipeline_mode<synchronous>, transform_indices = @transform_3, window_bounds = array<i64: 4, 32, 16>}, {pipeline_mode = #tpu.pipeline_mode<synchronous>, transform_indices = @transform_4, window_bounds = array<i64: 4, 16, 32>}, {pipeline_mode = #tpu.pipeline_mode<synchronous>, transform_indices = @transform_5, window_bounds = array<i64: 1, 32>}, {transform_indices = @transform_6, window_bounds = array<i64: 2, 8, 32>}]} {
    %c0 = arith.constant 0 : index
    %c0_0 = arith.constant 0 : index
    %c0_1 = arith.constant 0 : index
    %0 = vector.load %arg1[%c0, %c0_0, %c0_1] : memref<2x8x32xf32, #tpu.memory_space<vmem>>, vector<2x8x32xf32>
    %1 = vector.shape_cast %0 : vector<2x8x32xf32> to vector<16x32xf32>
    %2 = vector.shape_cast %1 : vector<16x32xf32> to vector<1x16x32xf32>
    %3 = vector.broadcast %2 : vector<1x16x32xf32> to vector<4x16x32xf32>
    %c0_2 = arith.constant 0 : index
    %c0_3 = arith.constant 0 : index
    %c0_4 = arith.constant 0 : index
    %4 = vector.load %arg2[%c0_2, %c0_3, %c0_4] : memref<4x32x16xf32, #tpu.memory_space<vmem>>, vector<4x32x16xf32>
    "tpu.trace_start"() <{level = 10 : i32, message = "hrd,hdk->hrk"}> : () -> ()
    %cst = arith.constant dense<0.000000e+00> : vector<4x16x16xf32>
    %5 = tpu.matmul %3, %4, %cst {dimension_numbers = #tpu.dot_dimension_numbers<[2], [1], [1], [2], [0, 0, 0, 1, 1, 2], [0], [0]>} : vector<4x16x32xf32>, vector<4x32x16xf32>, vector<4x16x16xf32> -> vector<4x16x16xf32>
    "tpu.trace_stop"() : () -> ()
    %c0_5 = arith.constant 0 : index
    %c0_6 = arith.constant 0 : index
    %c0_7 = arith.constant 0 : index
    %6 = vector.load %arg3[%c0_5, %c0_6, %c0_7] : memref<4x32x16xf32, #tpu.memory_space<vmem>>, vector<4x32x16xf32>
    "tpu.trace_start"() <{level = 10 : i32, message = "hrd,hdk->hrk"}> : () -> ()
    %cst_8 = arith.constant dense<0.000000e+00> : vector<4x16x16xf32>
    %7 = tpu.matmul %3, %6, %cst_8 {dimension_numbers = #tpu.dot_dimension_numbers<[2], [1], [1], [2], [0, 0, 0, 1, 1, 2], [0], [0]>} : vector<4x16x32xf32>, vector<4x32x16xf32>, vector<4x16x16xf32> -> vector<4x16x16xf32>
    "tpu.trace_stop"() : () -> ()
    %c0_9 = arith.constant 0 : index
    %c0_10 = arith.constant 0 : index
    %c0_11 = arith.constant 0 : index
    %8 = vector.load %arg4[%c0_9, %c0_10, %c0_11] : memref<4x32x16xf32, #tpu.memory_space<vmem>>, vector<4x32x16xf32>
    "tpu.trace_start"() <{level = 10 : i32, message = "hrd,hdk->hrk"}> : () -> ()
    %cst_12 = arith.constant dense<0.000000e+00> : vector<4x16x16xf32>
    %9 = tpu.matmul %3, %8, %cst_12 {dimension_numbers = #tpu.dot_dimension_numbers<[2], [1], [1], [2], [0, 0, 0, 1, 1, 2], [0], [0]>} : vector<4x16x32xf32>, vector<4x32x16xf32>, vector<4x16x16xf32> -> vector<4x16x16xf32>
    "tpu.trace_stop"() : () -> ()
    %10 = vector.shape_cast %5 : vector<4x16x16xf32> to vector<8x8x16xf32>
    %cst_13 = arith.constant 2.500000e-01 : f32
    %11 = vector.broadcast %cst_13 : f32 to vector<8x8x16xf32>
    %12 = arith.mulf %10, %11 : vector<8x8x16xf32>
    %13 = vector.shape_cast %7 : vector<4x16x16xf32> to vector<8x8x16xf32>
    %14 = vector.shape_cast %9 : vector<4x16x16xf32> to vector<8x8x16xf32>
    "tpu.trace_start"() <{level = 10 : i32, message = "bqd,bkd->bqk"}> : () -> ()
    %cst_14 = arith.constant dense<0.000000e+00> : vector<8x8x8xf32>
    %15 = tpu.matmul %12, %13, %cst_14 {dimension_numbers = #tpu.dot_dimension_numbers<[2], [2], [1], [1], [0, 0, 0, 1, 1, 1], [0], [0]>} : vector<8x8x16xf32>, vector<8x8x16xf32>, vector<8x8x8xf32> -> vector<8x8x8xf32>
    "tpu.trace_stop"() : () -> ()
    %cst_15 = arith.constant dense<0xFF800000> : vector<8x8xf32>
    %16 = vector.multi_reduction <maximumf>, %15, %cst_15 [2] : vector<8x8x8xf32> to vector<8x8xf32>
    %17 = vector.shape_cast %16 : vector<8x8xf32> to vector<8x8x1xf32>
    %18 = vector.broadcast %17 : vector<8x8x1xf32> to vector<8x8x8xf32>
    %19 = arith.subf %15, %18 : vector<8x8x8xf32>
    %20 = math.exp %19 : vector<8x8x8xf32>
    %cst_16 = arith.constant dense<0.000000e+00> : vector<8x8xf32>
    %21 = vector.multi_reduction <add>, %20, %cst_16 [2] : vector<8x8x8xf32> to vector<8x8xf32>
    %22 = vector.shape_cast %21 : vector<8x8xf32> to vector<8x8x1xf32>
    %23 = tpu.reciprocal %22 {approx = true} : vector<8x8x1xf32> -> vector<8x8x1xf32>
    %24 = vector.broadcast %23 : vector<8x8x1xf32> to vector<8x8x8xf32>
    %25 = arith.mulf %20, %24 : vector<8x8x8xf32>
    "tpu.trace_start"() <{level = 10 : i32, message = "bqk,bkd->bqd"}> : () -> ()
    %cst_17 = arith.constant dense<0.000000e+00> : vector<8x8x16xf32>
    %26 = tpu.matmul %25, %14, %cst_17 {dimension_numbers = #tpu.dot_dimension_numbers<[2], [1], [1], [2], [0, 0, 0, 1, 1, 2], [0], [0]>} : vector<8x8x8xf32>, vector<8x8x16xf32>, vector<8x8x16xf32> -> vector<8x8x16xf32>
    "tpu.trace_stop"() : () -> ()
    %27 = vector.shape_cast %26 : vector<8x8x16xf32> to vector<4x16x16xf32>
    %c0_18 = arith.constant 0 : index
    %c0_19 = arith.constant 0 : index
    %c0_20 = arith.constant 0 : index
    %28 = vector.load %arg5[%c0_18, %c0_19, %c0_20] : memref<4x16x32xf32, #tpu.memory_space<vmem>>, vector<4x16x32xf32>
    "tpu.trace_start"() <{level = 10 : i32, message = "hrd,hde->hre"}> : () -> ()
    %cst_21 = arith.constant dense<0.000000e+00> : vector<4x16x32xf32>
    %29 = tpu.matmul %27, %28, %cst_21 {dimension_numbers = #tpu.dot_dimension_numbers<[2], [1], [1], [2], [0, 0, 0, 1, 1, 2], [0], [0]>} : vector<4x16x16xf32>, vector<4x16x32xf32>, vector<4x16x32xf32> -> vector<4x16x32xf32>
    "tpu.trace_stop"() : () -> ()
    %cst_22 = arith.constant dense<0.000000e+00> : vector<16x32xf32>
    %30 = vector.multi_reduction <add>, %29, %cst_22 [0] : vector<4x16x32xf32> to vector<16x32xf32>
    %c0_23 = arith.constant 0 : index
    %c0_24 = arith.constant 0 : index
    %31 = vector.load %arg6[%c0_23, %c0_24] : memref<1x32xf32, #tpu.memory_space<vmem>>, vector<1x32xf32>
    %32 = vector.broadcast %31 : vector<1x32xf32> to vector<16x32xf32>
    %33 = arith.addf %30, %32 : vector<16x32xf32>
    %34 = vector.shape_cast %33 : vector<16x32xf32> to vector<2x8x32xf32>
    %c0_25 = arith.constant 0 : index
    %c0_26 = arith.constant 0 : index
    %c0_27 = arith.constant 0 : index
    %35 = vector.load %arg7[%c0_25, %c0_26, %c0_27] : memref<2x8x32xf32, #tpu.memory_space<vmem>>, vector<2x8x32xf32>
    tpu.vector_store %arg7[%c0_25, %c0_26, %c0_27], %34 {strides = array<i32>} : memref<2x8x32xf32, #tpu.memory_space<vmem>>, vector<2x8x32xf32>,
    return
  }
  func.func @transform_0(%arg0: i32) -> (i32, i32, i32) {
    %c0_i32 = arith.constant 0 : i32
    %c0_i32_0 = arith.constant 0 : i32
    %c0_i32_1 = arith.constant 0 : i32
    return %arg0, %c0_i32, %c0_i32_0 : i32, i32, i32
  }
  func.func @transform_1(%arg0: i32) -> (i32, i32, i32) {
    %c0_i32 = arith.constant 0 : i32
    %c0_i32_0 = arith.constant 0 : i32
    %c0_i32_1 = arith.constant 0 : i32
    %c0_i32_2 = arith.constant 0 : i32
    return %c0_i32, %c0_i32_0, %c0_i32_1 : i32, i32, i32
  }
  func.func @transform_2(%arg0: i32) -> (i32, i32, i32) {
    %c0_i32 = arith.constant 0 : i32
    %c0_i32_0 = arith.constant 0 : i32
    %c0_i32_1 = arith.constant 0 : i32
    %c0_i32_2 = arith.constant 0 : i32
    return %c0_i32, %c0_i32_0, %c0_i32_1 : i32, i32, i32
  }
  func.func @transform_3(%arg0: i32) -> (i32, i32, i32) {
    %c0_i32 = arith.constant 0 : i32
    %c0_i32_0 = arith.constant 0 : i32
    %c0_i32_1 = arith.constant 0 : i32
    %c0_i32_2 = arith.constant 0 : i32
    return %c0_i32, %c0_i32_0, %c0_i32_1 : i32, i32, i32
  }
  func.func @transform_4(%arg0: i32) -> (i32, i32, i32) {
    %c0_i32 = arith.constant 0 : i32
    %c0_i32_0 = arith.constant 0 : i32
    %c0_i32_1 = arith.constant 0 : i32
    %c0_i32_2 = arith.constant 0 : i32
    return %c0_i32, %c0_i32_0, %c0_i32_1 : i32, i32, i32
  }
  func.func @transform_5(%arg0: i32) -> (i32, i32) {
    %c0_i32 = arith.constant 0 : i32
    %c0_i32_0 = arith.constant 0 : i32
    %c0_i32_1 = arith.constant 0 : i32
    return %c0_i32, %c0_i32_0 : i32, i32
  }
  func.func @transform_6(%arg0: i32) -> (i32, i32, i32) {
    %c0_i32 = arith.constant 0 : i32
    %c0_i32_0 = arith.constant 0 : i32
    %c0_i32_1 = arith.constant 0 : i32
    return %arg0, %c0_i32, %c0_i32_0 : i32, i32, i32
  }
}

</mosaic_0001>

<bundles_post_ra>
// kernel: tpu_custom_call.1
= control target key start
LH: loop header
LB: loop body
LE: loop exit
PB: predicated region body
PF: predicated region fallthrough
CT: control target
= control target key end

     0   :  { %vm42_vm0 = vcmask 261120   ;;  %s1457_s0 = inlined_call_operand.vmem [shape: f32[2,8,32], index: 0, kind: input, shape index: {}]   ;;  %s1458_s1 = inlined_call_operand.vmem [shape: f32[4,32,16], index: 1, kind: input, shape index: {}]   ;;  %s1459_s2 = inlined_call_operand.vmem [shape: f32[4,32,16], index: 2, kind: input, shape index: {}]   ;;  %s1460_s3 = inlined_call_operand.vmem [shape: f32[4,32,16], index: 3, kind: input, shape index: {}]   ;;  %s1461_s4 = inlined_call_operand.vmem [shape: f32[4,16,32], index: 4, kind: input, shape index: {}]   ;;  %s1462_s5 = inlined_call_operand.vmem [shape: f32[1,32], index: 5, kind: input, shape index: {}]   ;;  %s1463_s6 = inlined_call_operand.hbm [shape: f32[2,8,32], index: 6, kind: output, shape index: {}]  }
   0x1   :  { %v29_v0 = vld [vmem:[%s1458_s1 + $0x18] sm:$0xff]  ;;  %v28_v2 = vld [vmem:[%s1458_s1 + $0x10] sm:$0xff]  ;;  %v27_v5 = vld [vmem:[%s1458_s1 + $0x8] sm:$0xff] }
   0x2   :  { %v33_v1 = vld [vmem:[%s1458_s1 + $0x38] sm:$0xff]  ;;  %61 = vmatpush.msra.mxu0 %v29_v0  ;;  %v32_v3 = vld [vmem:[%s1458_s1 + $0x30] sm:$0xff]  ;;  %v31_v6 = vld [vmem:[%s1458_s1 + $0x28] sm:$0xff] }
   0x3   :  { %84 = vmatpush.msra.mxu1 %v33_v1  ;;  %v41_v4 = vld [vmem:[%s1458_s1 + $0x78] sm:$0xff]  ;;  %v40_v7 = vld [vmem:[%s1458_s1 + $0x70] sm:$0xff]  ;;  %v39_v8 = vld [vmem:[%s1458_s1 + $0x68] sm:$0xff] }
   0x4   :  { %130 = vmatpush.msra.mxu3 %v41_v4  ;;  %62 = vmatpush.msra.mxu0 %v28_v2  ;;  %v26_v9 = vld [vmem:[%s1458_s1] sm:$0xff]  ;;  %v37_v11 = vld [vmem:[%s1458_s1 + $0x58] sm:$0xff]  ;;  %v36_v14 = vld [vmem:[%s1458_s1 + $0x50] sm:$0xff] }
   0x5   :  { %85 = vmatpush.msra.mxu1 %v32_v3  ;;  %v30_v10 = vld [vmem:[%s1458_s1 + $0x20] sm:$0xff]  ;;  %107 = vmatpush.msra.mxu2 %v37_v11  ;;  %v144_v15 = vld [vmem:[%s1459_s2 + $0x18] sm:$0xff]  ;;  %v35_v16 = vld [vmem:[%s1458_s1 + $0x48] sm:$0xff] }
   0x6   :  { %131 = vmatpush.msra.mxu3 %v40_v7  ;;  %63 = vmatpush.msra.mxu0 %v27_v5  ;;  %v1206_v12 = vld [vmem:[%s1457_s0] sm:$0xff]  ;;  %v148_v17 = vld [vmem:[%s1459_s2 + $0x38] sm:$0xff]  ;;  %v143_v18 = vld [vmem:[%s1459_s2 + $0x10] sm:$0xff] }
   0x7   :  { %86 = vmatpush.msra.mxu1 %v31_v6  ;;  %v38_v13 = vld [vmem:[%s1458_s1 + $0x60] sm:$0xff]  ;;  %108 = vmatpush.msra.mxu2 %v36_v14  ;;  %v156_v19 = vld [vmem:[%s1459_s2 + $0x78] sm:$0xff]  ;;  %v147_v21 = vld [vmem:[%s1459_s2 + $0x30] sm:$0xff] }
   0x8   :  { %132 = vmatpush.msra.mxu3 %v39_v8  ;;  %64 = vmatpush.msra.mxu0 %v26_v9  ;;  %v34_v20 = vld [vmem:[%s1458_s1 + $0x40] sm:$0xff]  ;;  %v142_v22 = vld [vmem:[%s1459_s2 + $0x8] sm:$0xff]  ;;  %v155_v24 = vld [vmem:[%s1459_s2 + $0x70] sm:$0xff] }
   0x9   :  { %87 = vmatpush.msra.mxu1 %v30_v10  ;;  %1011 = vmatmul.msk.f32.vlgmr.msra.gmra.mxu0 %vm42_vm0, %v1206_v12  ;;  %v146_v23 = vld [vmem:[%s1459_s2 + $0x28] sm:$0xff] }
   0xa   :  { %1013 = vmatmul.msk.f32.vlgmr.msra.gmra.mxu1 %vm42_vm0, %v1206_v12  ;;  %133 = vmatpush.msra.mxu3 %v38_v13  ;;  %v1253_v25 = vld [vmem:[%s1457_s0 + $0x8] sm:$0xff] }
   0xb   :  { %1017 = vmatmul.msk.f32.vlgmr.msra.gmra.mxu3 %vm42_vm0, %v1206_v12  ;;  %169 = vmatpush.msrb.mxu0 %v144_v15 }
   0xc   :  { %109 = vmatpush.msra.mxu2 %v35_v16  ;;  %192 = vmatpush.msrb.mxu1 %v148_v17 }
   0xd   :  { %170 = vmatpush.msrb.mxu0 %v143_v18  ;;  %238 = vmatpush.msrb.mxu3 %v156_v19 }
   0xe   :  { %110 = vmatpush.msra.mxu2 %v34_v20  ;;  %193 = vmatpush.msrb.mxu1 %v147_v21 }
   0xf   :  { %11 = vsyncpa [#allocation3], 0  ;;  %1015 = vmatmul.msk.f32.vlgmr.msra.gmra.mxu2 %vm42_vm0, %v1206_v12  ;;  %171 = vmatpush.msrb.mxu0 %v142_v22  ;;  %v141_v26 = vld [vmem:[%s1459_s2] sm:$0xff]  ;;  %v152_v28 = vld [vmem:[%s1459_s2 + $0x58] sm:$0xff]  ;;  %vm365_vm1 = vcmask 130048   ;;  %vm574_vm2 = vcmask 64512  }
  0x10   :  { %v145_v27 = vld [vmem:[%s1459_s2 + $0x20] sm:$0xff]  ;;  %194 = vmatpush.msrb.mxu1 %v146_v23  ;;  %239 = vmatpush.msrb.mxu3 %v155_v24  ;;  %v154_v29 = vld [vmem:[%s1459_s2 + $0x68] sm:$0xff]  ;;  %v252_v30 = vld [vmem:[%s1460_s3 + $0x18] sm:$0xff]  ;;  %s1129_s9 = smov [#allocation2]   ;;  %s999_s12 = sshll.u32 %s1463_s6, 4  ;;  %s1000_s12 = int_to_ptr.hbm [resolvable:$true] %s999_s12 }
  0x11   :  { %1012 = vmatmul.msk.f32.gmra.mxu0 %vm42_vm0, %v1253_v25  ;;  %v151_v31 = vld [vmem:[%s1459_s2 + $0x50] sm:$0xff]  ;;  %v153_v32 = vld [vmem:[%s1459_s2 + $0x60] sm:$0xff]  ;;  %215 = vmatpush.msrb.mxu2 %v152_v28  ;;  %v150_v34 = vld [vmem:[%s1459_s2 + $0x48] sm:$0xff]  ;;  %s997_s10 = sshll.u32 %s1129_s9, 4  ;;  %s1130_s13 = smov 128   ;;  %s998_s10 = int_to_ptr.vmem [resolvable:$true] %s997_s10 }
  0x12   :  { %1014 = vmatmul.msk.f32.gmra.mxu1 %vm42_vm0, %v1253_v25  ;;  %172 = vmatpush.msrb.mxu0 %v141_v26  ;;  %v251_v33 = vld [vmem:[%s1460_s3 + $0x10] sm:$0xff]  ;;  %v149_v35 = vld [vmem:[%s1459_s2 + $0x40] sm:$0xff]  ;;  %v260_v36 = vld [vmem:[%s1460_s3 + $0x58] sm:$0xff]  ;;  %s1131_s14 = smov 8  }
  0x13   :  { %195 = vmatpush.msrb.mxu1 %v145_v27  ;;  %1018 = vmatmul.msk.f32.gmra.mxu3 %vm42_vm0, %v1253_v25  ;;  %v259_v37 = vld [vmem:[%s1460_s3 + $0x50] sm:$0xff]  ;;  %v250_v38 = vld [vmem:[%s1460_s3 + $0x8] sm:$0xff]  ;;  %v249_v40 = vld [vmem:[%s1460_s3] sm:$0xff] }
  0x14   :  { %240 = vmatpush.msrb.mxu3 %v154_v29  ;;  %277 = vmatpush.msra.mxu0 %v252_v30  ;;  %v258_v39 = vld [vmem:[%s1460_s3 + $0x48] sm:$0xff]  ;;  %v257_v41 = vld [vmem:[%s1460_s3 + $0x40] sm:$0xff]  ;;  %v256_v42 = vld [vmem:[%s1460_s3 + $0x38] sm:$0xff] }
  0x15   :  { %216 = vmatpush.msrb.mxu2 %v151_v31  ;;  %v264_v43 = vld [vmem:[%s1460_s3 + $0x78] sm:$0xff]  ;;  %300 = vmatpush.msra.mxu1 %v256_v42  ;;  %v255_v44 = vld [vmem:[%s1460_s3 + $0x30] sm:$0xff]  ;;  %v254_v46 = vld [vmem:[%s1460_s3 + $0x28] sm:$0xff] }
  0x16   :  { %241 = vmatpush.msrb.mxu3 %v153_v32  ;;  %278 = vmatpush.msra.mxu0 %v251_v33  ;;  %v263_v45 = vld [vmem:[%s1460_s3 + $0x70] sm:$0xff]  ;;  %v262_v47 = vld [vmem:[%s1460_s3 + $0x68] sm:$0xff]  ;;  %v253_v48 = vld [vmem:[%s1460_s3 + $0x20] sm:$0xff] }
  0x17   :  { %1016 = vmatmul.msk.f32.gmra.mxu2 %vm42_vm0, %v1253_v25  ;;  %301 = vmatpush.msra.mxu1 %v255_v44  ;;  %v261_v49 = vld [vmem:[%s1460_s3 + $0x60] sm:$0xff] }
  0x18   :  { %217 = vmatpush.msrb.mxu2 %v150_v34  ;;  %279 = vmatpush.msra.mxu0 %v250_v38 }
  0x19   :  { %1019 = vmatmul.msk.f32.vlgmr.msrb.gmra.mxu0 %vm42_vm0, %v1206_v12  ;;  %346 = vmatpush.msra.mxu3 %v264_v43 }
  0x1a   :  { %1021 = vmatmul.msk.f32.vlgmr.msrb.gmra.mxu1 %vm42_vm0, %v1206_v12  ;;  %218 = vmatpush.msrb.mxu2 %v149_v35 }
  0x1b   :  { %1025 = vmatmul.msk.f32.vlgmr.msrb.gmra.mxu3 %vm42_vm0, %v1206_v12  ;;  %280 = vmatpush.msra.mxu0 %v249_v40 }
  0x1c   :  { %323 = vmatpush.msra.mxu2 %v260_v36  ;;  %347 = vmatpush.msra.mxu3 %v263_v45 }
  0x1d   :  { %302 = vmatpush.msra.mxu1 %v254_v46 }
  0x1e   :  { %324 = vmatpush.msra.mxu2 %v259_v37  ;;  %348 = vmatpush.msra.mxu3 %v262_v47 }
  0x1f   :  { %1023 = vmatmul.msk.f32.vlgmr.msrb.gmra.mxu2 %vm42_vm0, %v1206_v12  ;;  %303 = vmatpush.msra.mxu1 %v253_v48 }
  0x20   :  { %325 = vmatpush.msra.mxu2 %v258_v39  ;;  %349 = vmatpush.msra.mxu3 %v261_v49 }
  0x21   :  { %1020 = vmatmul.msk.f32.gmra.mxu0 %vm42_vm0, %v1253_v25 }
  0x22   :  { %1022 = vmatmul.msk.f32.gmra.mxu1 %vm42_vm0, %v1253_v25  ;;  %326 = vmatpush.msra.mxu2 %v257_v41 }
  0x23   :  { %1026 = vmatmul.msk.f32.gmra.mxu3 %vm42_vm0, %v1253_v25 }
  0x27   :  { %1024 = vmatmul.msk.f32.gmra.mxu2 %vm42_vm0, %v1253_v25 }
  0x29   :  { %1027 = vmatmul.msk.f32.vlgmr.msra.gmra.mxu0 %vm42_vm0, %v1206_v12 }
  0x2a   :  { %1029 = vmatmul.msk.f32.vlgmr.msra.gmra.mxu1 %vm42_vm0, %v1206_v12 }
  0x2b   :  { %1033 = vmatmul.msk.f32.vlgmr.msra.gmra.mxu3 %vm42_vm0, %v1206_v12 }
  0x2f   :  { %1031 = vmatmul.msk.f32.vlgmr.msra.gmra.mxu2 %vm42_vm0, %v1206_v12 }
  0x31   :  { %1028 = vmatmul.msk.f32.gmra.mxu0 %vm42_vm0, %v1253_v25 }
  0x32   :  { %1030 = vmatmul.msk.f32.gmra.mxu1 %vm42_vm0, %v1253_v25 }
  0x33   :  { %1034 = vmatmul.msk.f32.gmra.mxu3 %vm42_vm0, %v1253_v25 }
  0x37   :  { %1032 = vmatmul.msk.f32.gmra.mxu2 %vm42_vm0, %v1253_v25 }
  0x86   :  { %v66_v50 = vpop.f32.mrf.mxu0 }
  0x87   :  { %v89_v51 = vpop.f32.mrf.mxu1  ;;  %v357_v59 = vmul.f32 0.25, %v66_v50 }
  0x88   :  { %v359_v60 = vmul.f32 0.25, %v89_v51 }
  0x8e   :  { %v69_v52 = vpop.f32.mrf.mxu0  ;;  %v135_v54 = vpop.f32.mrf.mxu3 }
  0x8f   :  { %v92_v53 = vpop.f32.mrf.mxu1  ;;  %v358_v1 = vmul.f32 0.25, %v69_v52  ;;  %v363_v3 = vmul.f32 0.25, %v135_v54 }
  0x90   :  { %v360_v2 = vmul.f32 0.25, %v92_v53 }
  0x92   :  { %v112_v55 = vpop.f32.mrf.mxu2 }
  0x93   :  { %v361_v4 = vmul.f32 0.25, %v112_v55 }
  0x96   :  { %v174_v56 = vpop.f32.mrf.mxu0  ;;  %v138_v58 = vpop.f32.mrf.mxu3 }
  0x97   :  { %v197_v57 = vpop.f32.mrf.mxu1  ;;  %1035 = vmatpush.xpose.msk.msrb.mxu0 %vm365_vm1, %v174_v56  ;;  %v364_v7 = vmul.f32 0.25, %v138_v58 }
  0x98   :  { %1039 = vmatpush.xpose.msk.msrb.mxu2 %vm365_vm1, %v197_v57 }
  0x9a   :  { %1036 = vmatmul.msk.f32.vlgmr.msrb.gmra.mxu0 %vm365_vm1, %v357_v59  ;;  %v115_v61 = vpop.f32.mrf.mxu2 }
  0x9b   :  { %1040 = vmatmul.msk.f32.vlgmr.msrb.gmra.mxu2 %vm365_vm1, %v359_v60  ;;  %v362_v8 = vmul.f32 0.25, %v115_v61 }
  0x9e   :  { %v177_v62 = vpop.f32.mrf.mxu0  ;;  %v243_v0 = vpop.f32.mrf.mxu3 }
  0x9f   :  { %v200_v63 = vpop.f32.mrf.mxu1  ;;  %1037 = vmatpush.xpose.msk.msrb.mxu1 %vm365_vm1, %v177_v62  ;;  %1047 = vmatpush.xpose.msk.msra.mxu2 %vm365_vm1, %v243_v0 }
  0xa0   :  { %1041 = vmatpush.xpose.msk.msrb.mxu3 %vm365_vm1, %v200_v63 }
  0xa2   :  { %1038 = vmatmul.msk.f32.vlgmr.msrb.gmra.mxu1 %vm365_vm1, %v358_v1  ;;  %v220_v5 = vpop.f32.mrf.mxu2 }
  0xa3   :  { %1042 = vmatmul.msk.f32.vlgmr.msrb.gmra.mxu3 %vm365_vm1, %v360_v2  ;;  %1048 = vmatmul.msk.f32.vlgmr.msra.gmra.mxu2 %vm365_vm1, %v363_v3 }
  0xa4   :  { %1043 = vmatpush.xpose.msk.msra.mxu0 %vm365_vm1, %v220_v5 }
  0xa6   :  { %v246_v6 = vpop.f32.mrf.mxu3  ;;  %v282_v10 = vpop.f32.mrf.mxu0 }
  0xa7   :  { %1044 = vmatmul.msk.f32.vlgmr.msra.gmra.mxu0 %vm365_vm1, %v361_v4  ;;  %1049 = vmatpush.xpose.msk.msra.mxu3 %vm365_vm1, %v246_v6  ;;  %v305_v13 = vpop.f32.mrf.mxu1 }
  0xa8   :  { %681 = vmatpush.msrb.mxu0 %v282_v10  ;;  %727 = vmatpush.msrb.mxu2 %v305_v13 }
  0xaa   :  { %v223_v9 = vpop.f32.mrf.mxu2 }
  0xab   :  { %1050 = vmatmul.msk.f32.vlgmr.msra.gmra.mxu3 %vm365_vm1, %v364_v7  ;;  %1045 = vmatpush.xpose.msk.msra.mxu1 %vm365_vm1, %v223_v9 }
  0xae   :  { %1046 = vmatmul.msk.f32.vlgmr.msra.gmra.mxu1 %vm365_vm1, %v362_v8  ;;  %v285_v12 = vpop.f32.mrf.mxu0  ;;  %v351_v15 = vpop.f32.mrf.mxu3 }
  0xaf   :  { %704 = vmatpush.msrb.mxu1 %v285_v12  ;;  %v308_v16 = vpop.f32.mrf.mxu1  ;;  %819 = vmatpush.msra.mxu2 %v351_v15 }
  0xb0   :  { %750 = vmatpush.msrb.mxu3 %v308_v16 }
  0xb2   :  { %v328_v11 = vpop.f32.mrf.mxu2 }
  0xb3   :  { %773 = vmatpush.msra.mxu0 %v328_v11 }
  0xb6   :  { %v354_v17 = vpop.f32.mrf.mxu3 }
  0xb7   :  { %842 = vmatpush.msra.mxu3 %v354_v17 }
  0xba   :  { %v331_v14 = vpop.f32.mrf.mxu2 }
  0xbb   :  { %796 = vmatpush.msra.mxu1 %v331_v14 }
 0x117   :  { %v389_v18 = vpop.f32.mrf.mxu0 }
 0x118   :  { %v575_v26 = vsel %vm574_vm2, %v389_v18, -inf }
 0x11e   :  { %v441_v19 = vpop.f32.mrf.mxu2 }
 0x11f   :  { %v581_v20 = vsel %vm574_vm2, %v441_v19, -inf  ;;  %v415_v21 = vpop.f32.mrf.mxu1 }
 0x120   :  { %582 = vmax.xlane.f32.xlu0 %v581_v20  ;;  %v578_v22 = vsel %vm574_vm2, %v415_v21, -inf }
 0x121   :  { %579 = vmax.xlane.f32.xlu2 %v578_v22 }
 0x124   :  { %v493_v24 = vpop.f32.mrf.mxu0 }
 0x125   :  { %v587_v27 = vsel %vm574_vm2, %v493_v24, -inf }
 0x126   :  { %v467_v23 = vpop.f32.mrf.mxu3  ;;  %v545_v28 = vpop.f32.mrf.mxu2 }
 0x127   :  { %v584_v25 = vsel %vm574_vm2, %v467_v23, -inf  ;;  %v593_v30 = vsel %vm574_vm2, %v545_v28, -inf }
 0x128   :  { %585 = vmax.xlane.f32.xlu1 %v584_v25  ;;  %576 = vmax.xlane.f32.xlu0 %v575_v26 }
 0x129   :  { %588 = vmax.xlane.f32.xlu2 %v587_v27 }
 0x12b   :  { %v519_v32 = vpop.f32.mrf.mxu1 }
 0x12c   :  { %v590_v33 = vsel %vm574_vm2, %v519_v32, -inf }
 0x12e   :  { %v571_v29 = vpop.f32.mrf.mxu3 }
 0x12f   :  { %v596_v31 = vsel %vm574_vm2, %v571_v29, -inf }
 0x130   :  { %594 = vmax.xlane.f32.xlu1 %v593_v30  ;;  %597 = vmax.xlane.f32.xlu0 %v596_v31 }
 0x138   :  { %591 = vmax.xlane.f32.xlu1 %v590_v33 }
 0x193   :  { %v583_v34 = vpop.xlane.xlu0 %582 }
 0x194   :  { %v601_v35 = vsub.f32 %v441_v19, %v583_v34  ;;  %v580_v36 = vpop.xlane.xlu2 %579 }
 0x195   :  { %v600_v47 = vsub.f32 %v415_v21, %v580_v36  ;;  %v849_v36 = vld [vmem:[%s1461_s4 + $0x10] sm:$0xff] }
 0x196   :  { %v611_v37 = vmul.f32 1.442695, %v601_v35  ;;  %v848_v35 = vld [vmem:[%s1461_s4 + $0x8] sm:$0xff] }
 0x197   :  { %v609_v50 = vmul.f32 1.442695, %v600_v47 }
 0x198   :  { %1071 = vpow2.f32 %v611_v37  ;;  %v847_v37 = vld [vmem:[%s1461_s4] sm:$0xff] }
 0x19b   :  { %v586_v38 = vpop.xlane.xlu1 %585  ;;  %v577_v39 = vpop.xlane.xlu0 %576 }
 0x19c   :  { %v602_v40 = vsub.f32 %v467_v23, %v586_v38  ;;  %v599_v41 = vsub.f32 %v389_v18, %v577_v39  ;;  %v589_v42 = vpop.xlane.xlu2 %588  ;;  %v852_v38 = vld [vmem:[%s1461_s4 + $0x28] sm:$0xff]  ;;  %v851_v39 = vld [vmem:[%s1461_s4 + $0x20] sm:$0xff] }
 0x19d   :  { %v603_v46 = vsub.f32 %v493_v24, %v589_v42 }
 0x19e   :  { %v1072_v43 = vpop.eup %1071  ;;  %v613_v44 = vmul.f32 1.442695, %v602_v40  ;;  %v607_v45 = vmul.f32 1.442695, %v599_v41  ;;  %v854_v40 = vld [vmem:[%s1461_s4 + $0x38] sm:$0xff]  ;;  %v853_v41 = vld [vmem:[%s1461_s4 + $0x30] sm:$0xff] }
 0x19f   :  { %v629_v48 = vsel %vm574_vm2, %v1072_v43, 0.0  ;;  %v615_v49 = vmul.f32 1.442695, %v603_v46 }
 0x1a0   :  { %1073 = vpow2.f32 %v613_v44  ;;  %630 = vadd.xlane.f32.xlu2 %v629_v48 }
 0x1a1   :  { %1075 = vpow2.f32 %v607_v45 }
 0x1a2   :  { %1077 = vpow2.f32 %v615_v49 }
 0x1a3   :  { %v595_v51 = vpop.xlane.xlu1 %594  ;;  %v598_v53 = vpop.xlane.xlu0 %597  ;;  %1079 = vpow2.f32 %v609_v50 }
 0x1a4   :  { %v605_v52 = vsub.f32 %v545_v28, %v595_v51  ;;  %v606_v56 = vsub.f32 %v571_v29, %v598_v53  ;;  %v850_v29 = vld [vmem:[%s1461_s4 + $0x18] sm:$0xff] }
 0x1a6   :  { %v1074_v54 = vpop.eup %1073  ;;  %v619_v55 = vmul.f32 1.442695, %v605_v52  ;;  %v621_v60 = vmul.f32 1.442695, %v606_v56 }
 0x1a7   :  { %v1076_v57 = vpop.eup %1075  ;;  %v632_v58 = vsel %vm574_vm2, %v1074_v54, 0.0 }
 0x1a8   :  { %1081 = vpow2.f32 %v619_v55  ;;  %633 = vadd.xlane.f32.xlu1 %v632_v58  ;;  %v623_v59 = vsel %vm574_vm2, %v1076_v57, 0.0  ;;  %v1078_v62 = vpop.eup %1077 }
 0x1a9   :  { %624 = vadd.xlane.f32.xlu0 %v623_v59  ;;  %v1080_v0 = vpop.eup %1079  ;;  %1083 = vpow2.f32 %v621_v60  ;;  %v635_v4 = vsel %vm574_vm2, %v1078_v62, 0.0  ;;  %v1070_v60 = vld [vmem:[%s1462_s5] ss:$0 sm:$0xff] }
 0x1aa   :  { %v626_v5 = vsel %vm574_vm2, %v1080_v0, 0.0 }
 0x1ab   :  { %v592_v61 = vpop.xlane.xlu1 %591 }
 0x1ac   :  { %v604_v63 = vsub.f32 %v519_v32, %v592_v61 }
 0x1ae   :  { %v1082_v1 = vpop.eup %1081  ;;  %v617_v2 = vmul.f32 1.442695, %v604_v63 }
 0x1af   :  { %v641_v3 = vsel %vm574_vm2, %v1082_v1, 0.0  ;;  %v1084_v6 = vpop.eup %1083 }
 0x1b0   :  { %1085 = vpow2.f32 %v617_v2  ;;  %642 = vadd.xlane.f32.xlu2 %v641_v3  ;;  %636 = vadd.xlane.f32.xlu1 %v635_v4  ;;  %v644_v9 = vsel %vm574_vm2, %v1084_v6, 0.0 }
 0x1b1   :  { %627 = vadd.xlane.f32.xlu0 %v626_v5 }
 0x1b6   :  { %v1086_v7 = vpop.eup %1085 }
 0x1b7   :  { %v638_v8 = vsel %vm574_vm2, %v1086_v7, 0.0 }
 0x1b8   :  { %645 = vadd.xlane.f32.xlu2 %v644_v9 }
 0x1b9   :  { %639 = vadd.xlane.f32.xlu0 %v638_v8 }
 0x213   :  { %v631_v10 = vpop.xlane.xlu2 %630 }
 0x214   :  { %1087 = vrcp.f32 %v631_v10 }
 0x21a   :  { %v1088_v11 = vpop.eup %1087 }
 0x21b   :  { %v657_v12 = vmul.f32 %v1088_v11, %v1072_v43  ;;  %v634_v13 = vpop.xlane.xlu1 %633 }
 0x21c   :  { %1089 = vrcp.f32 %v634_v13  ;;  %v625_v14 = vpop.xlane.xlu0 %624 }
 0x21d   :  { %1091 = vrcp.f32 %v625_v14  ;;  %1053 = vmatmul.msk.f32.vlgmr.msrb.gmra.mxu2 %vm574_vm2, %v657_v12 }
 0x21e   :  { %933 = vmatpush.msrb.mxu2 %v852_v38 }
 0x220   :  { %934 = vmatpush.msrb.mxu2 %v851_v39 }
 0x222   :  { %v1090_v15 = vpop.eup %1089 }
 0x223   :  { %v1092_v16 = vpop.eup %1091  ;;  %v658_v17 = vmul.f32 %v1090_v15, %v1074_v54  ;;  %v637_v18 = vpop.xlane.xlu1 %636 }
 0x224   :  { %v643_v19 = vpop.xlane.xlu2 %642  ;;  %v655_v20 = vmul.f32 %v1092_v16, %v1076_v57  ;;  %v628_v21 = vpop.xlane.xlu0 %627  ;;  %1093 = vrcp.f32 %v637_v18 }
 0x225   :  { %1095 = vrcp.f32 %v628_v21  ;;  %1054 = vmatmul.msk.f32.vlgmr.msrb.gmra.mxu3 %vm574_vm2, %v658_v17 }
 0x226   :  { %1097 = vrcp.f32 %v643_v19  ;;  %1051 = vmatmul.msk.f32.vlgmr.msrb.gmra.mxu0 %vm574_vm2, %v655_v20  ;;  %962 = vmatpush.msrb.mxu3 %v854_v40 }
 0x227   :  { %875 = vmatpush.msrb.mxu0 %v848_v35 }
 0x228   :  { %963 = vmatpush.msrb.mxu3 %v853_v41 }
 0x229   :  { %876 = vmatpush.msrb.mxu0 %v847_v37 }
 0x22a   :  { %v1094_v22 = vpop.eup %1093 }
 0x22b   :  { %v1096_v23 = vpop.eup %1095  ;;  %v659_v24 = vmul.f32 %v1094_v22, %v1078_v62 }
 0x22c   :  { %v646_v25 = vpop.xlane.xlu2 %645  ;;  %v1098_v26 = vpop.eup %1097  ;;  %v656_v27 = vmul.f32 %v1096_v23, %v1080_v0 }
 0x22d   :  { %v640_v28 = vpop.xlane.xlu0 %639  ;;  %1099 = vrcp.f32 %v646_v25  ;;  %v661_v30 = vmul.f32 %v1098_v26, %v1082_v1 }
 0x22e   :  { %1101 = vrcp.f32 %v640_v28  ;;  %1052 = vmatmul.msk.f32.vlgmr.msrb.gmra.mxu1 %vm574_vm2, %v656_v27  ;;  %1055 = vmatmul.msk.f32.vlgmr.msra.gmra.mxu0 %vm574_vm2, %v659_v24 }
 0x22f   :  { %1057 = vmatmul.msk.f32.vlgmr.msra.gmra.mxu2 %vm574_vm2, %v661_v30  ;;  %904 = vmatpush.msrb.mxu1 %v850_v29 }
 0x231   :  { %905 = vmatpush.msrb.mxu1 %v849_v36 }
 0x233   :  { %v1100_v31 = vpop.eup %1099 }
 0x234   :  { %v1102_v32 = vpop.eup %1101  ;;  %v662_v33 = vmul.f32 %v1100_v31, %v1084_v6 }
 0x235   :  { %v660_v34 = vmul.f32 %v1102_v32, %v1086_v7 }
 0x236   :  { %1058 = vmatmul.msk.f32.vlgmr.msra.gmra.mxu3 %vm574_vm2, %v662_v33 }
 0x237   :  { %1056 = vmatmul.msk.f32.vlgmr.msra.gmra.mxu1 %vm574_vm2, %v660_v34 }
 0x2a0   :  { %v729_v42 = vpop.f32.mrf.mxu2 }
 0x2a1   :  { %1061 = vmatmul.msk.f32.vlgmr.msrb.gmra.mxu1 %vm365_vm1, %v729_v42 }
 0x2a3   :  { %v683_v43 = vpop.f32.mrf.mxu0 }
 0x2a4   :  { %1059 = vmatmul.msk.f32.vlgmr.msrb.gmra.mxu0 %vm365_vm1, %v683_v43 }
 0x2a8   :  { %v752_v44 = vpop.f32.mrf.mxu3 }
 0x2a9   :  { %1062 = vmatmul.msk.f32.gmra.mxu1 %vm365_vm1, %v752_v44 }
 0x2ab   :  { %v706_v45 = vpop.f32.mrf.mxu1  ;;  %v775_v46 = vpop.f32.mrf.mxu0 }
 0x2ac   :  { %1060 = vmatmul.msk.f32.gmra.mxu0 %vm365_vm1, %v706_v45  ;;  %1063 = vmatmul.msk.f32.vlgmr.msrb.gmra.mxu2 %vm365_vm1, %v775_v46 }
 0x2b2   :  { %v821_v47 = vpop.f32.mrf.mxu2 }
 0x2b3   :  { %1065 = vmatmul.msk.f32.vlgmr.msrb.gmra.mxu3 %vm365_vm1, %v821_v47 }
 0x2b4   :  { %v798_v48 = vpop.f32.mrf.mxu1 }
 0x2b5   :  { %1064 = vmatmul.msk.f32.gmra.mxu2 %vm365_vm1, %v798_v48 }
 0x2b9   :  { %v844_v49 = vpop.f32.mrf.mxu3 }
 0x2bb   :  { %1066 = vmatmul.msk.f32.gmra.mxu3 %vm365_vm1, %v844_v49 }
 0x31e   :  { %v907_v51 = vpop.f32.mrf.mxu1 }
 0x31f   :  { %v972_v54 = vsel %vm42_vm0, %v907_v51, 0.0 }
 0x321   :  { %v878_v50 = vpop.f32.mrf.mxu0 }
 0x322   :  { %v971_v53 = vsel %vm42_vm0, %v878_v50, 0.0 }
 0x323   :  { %v973_v56 = vadd.f32 %v972_v54, %v971_v53 }
 0x326   :  { %v910_v62 = vpop.f32.mrf.mxu1 }
 0x327   :  { %v979_v3 = vsel %vm42_vm0, %v910_v62, 0.0 }
 0x329   :  { %v881_v57 = vpop.f32.mrf.mxu0 }
 0x32a   :  { %v978_v1 = vsel %vm42_vm0, %v881_v57, 0.0 }
 0x32b   :  { %v980_v5 = vadd.f32 %v979_v3, %v978_v1 }
 0x32f   :  { %v936_v52 = vpop.f32.mrf.mxu2 }
 0x330   :  { %v974_v55 = vsel %vm42_vm0, %v936_v52, 0.0 }
 0x331   :  { %v975_v58 = vadd.f32 %v974_v55, %v973_v56 }
 0x336   :  { %v965_v59 = vpop.f32.mrf.mxu3 }
 0x337   :  { %v976_v61 = vsel %vm42_vm0, %v965_v59, 0.0 }
 0x338   :  { %v977_v63 = vadd.f32 %v976_v61, %v975_v58  ;;  %v939_v0 = vpop.f32.mrf.mxu2 }
 0x339   :  { %v981_v4 = vsel %vm42_vm0, %v939_v0, 0.0 }
 0x33a   :  { %v989_v2 = vadd.f32 %v1070_v60, %v977_v63  ;;  %v982_v6 = vadd.f32 %v981_v4, %v980_v5 }
 0x33c   :  { %991 = vst.msk [vmem:[#allocation2] sm:$0xff] %vm42_vm0, %v989_v2 }
 0x33e   :  { %v968_v7 = vpop.f32.mrf.mxu3 }
 0x33f   :  { %v983_v8 = vsel %vm42_vm0, %v968_v7, 0.0 }
 0x340   :  { %v984_v9 = vadd.f32 %v983_v8, %v982_v6 }
 0x342   :  { %v990_v10 = vadd.f32 %v1070_v60, %v984_v9 }
 0x344   :  { %992 = vst.msk [vmem:[#allocation2 + $0x8] sm:$0xff] %vm42_vm0, %v990_v10 }
 0x345   :  { %1005 = dma.vmem_to_hbm [thread:$0]  %s998_s10, 256, %s1000_s12, [#allocation3], %s1130_s13, %s1130_s13, %s1131_s14  }
 0x346   :  { %1127 = dma.done.wait [#allocation3], 256  }
 0x347   :  { %1128 = vsyncadd [#allocation3], 4294967040 }
 0x348   :  { %1010 = vsyncpa [#allocation3], 1 }

</bundles_post_ra>
